<compile_context>
chip_gen: v7x
topology: tpu7x:2x2x1
jax: 0.10.0
libtpu: 0.0.40
codegen_flags: <defaults>
</compile_context>

<pallas_src>
import functools

import jax
import jax.numpy as jnp
from jax.experimental import pallas as pl
from jax.experimental.pallas import tpu as pltpu


# ----------------------------- hyperparameters ------------------------------
BATCH = 8          # bs
IN_DIM = 32        # args.actor_input_dim_R
HIDDEN = 32        # args.hidden_dim
ACT_DIM = 4        # args.action_dim_Reconn
TURN_RANGE = 3.0   # args.turn_range
TILE_T = 8         # timesteps per grid step (amortizes per-step overhead)

H3 = 3 * HIDDEN            # 96  : GRU gate width (r | z | n)
A2 = 2 * ACT_DIM           # 8   : fused head width  [mu | std]
OUT_W = A2 + HIDDEN        # 40  : fused output width [mu | std | h]

# packed weight-slab row layout (128 x 128 f32 slab)
W1_ROW = 0                 # fc1 weight rows        [0, 32)
WIH_ROW = IN_DIM           # GRU input weight rows  [32, 64)
WHH_ROW = IN_DIM + HIDDEN  # GRU hidden weight rows [64, 96)
WH_ROW = IN_DIM + 2 * HIDDEN  # extended head rows  [96, 128)
W_ROWS = 128
W_COLS = 128


def _softplus(x):
    # matches torch.nn.functional.softplus (beta=1, threshold=20)
    return jnp.where(x > 20.0, x, jnp.log1p(jnp.exp(jnp.minimum(x, 20.0))))


# --------------------------------- kernel -----------------------------------
def actor_kernel(x_ref, h0_ref, w_ref, b_ref, out_ref, h_scr, *, tile_t):
    H, A = HIDDEN, ACT_DIM
    B = x_ref.shape[1]

    # initialize the recurrent carry from h_in on the first grid step
    @pl.when(pl.program_id(0) == 0)
    def _():
        h_scr[...] = h0_ref[...]

    # ---- chunk prologue: fc1 + relu for all tile_t steps in ONE dot ----
    # fc1 has no dependence on h, so it is lifted off the serial recurrence.
    x_all = x_ref[...].reshape(tile_t * B, IN_DIM)               # [tile_t*B, IN]
    w1 = w_ref[W1_ROW:W1_ROW + IN_DIM, 0:H]
    b1 = b_ref[0:1, 0:H]
    a1_all = jnp.maximum(
        jnp.dot(x_all, w1, preferred_element_type=jnp.float32) + b1, 0.0)

    # GRU weights/biases: loaded once per chunk from the resident slabs
    wih = w_ref[WIH_ROW:WIH_ROW + H, 0:H3]                       # [H, 3H]
    whh = w_ref[WHH_ROW:WHH_ROW + H, 0:H3]                       # [H, 3H]
    bih = b_ref[1:2, 0:H3]
    bhh = b_ref[2:3, 0:H3]

    # ---- serial recurrence over the chunk (fully unrolled) ----
    # Two summed K=32 dots per step (no lane concatenate of [a1 | h]).
    h = h_scr[...]
    h_steps = []
    for t in range(tile_t):
        a1 = a1_all[t * B:(t + 1) * B]                           # [B, H]
        gx = jnp.dot(a1, wih, preferred_element_type=jnp.float32) + bih
        gh = jnp.dot(h, whh, preferred_element_type=jnp.float32) + bhh
        rz = jax.nn.sigmoid(gx[:, 0:2 * H] + gh[:, 0:2 * H])     # fused (r|z)
        r = rz[:, 0:H]
        z = rz[:, H:2 * H]
        n = jnp.tanh(gx[:, 2 * H:H3] + r * gh[:, 2 * H:H3])
        h = (1.0 - z) * n + z * h
        h_steps.append(h)
    h_scr[...] = h                                               # carry to next chunk

    # ---- chunk epilogue: fused heads + h passthrough in ONE dot ----
    # extended head weight columns: [ W_mu | W_std | I_H ]  -> [mu_pre|std_pre|h]
    h_all = jnp.concatenate(h_steps, axis=0)                     # [tile_t*B, H] (sublane)
    wh = w_ref[WH_ROW:WH_ROW + H, 0:OUT_W]                       # [H, 2A+H]
    bh = b_ref[3:4, 0:OUT_W]
    v = jnp.dot(h_all, wh, preferred_element_type=jnp.float32) + bh
    col = jax.lax.broadcasted_iota(jnp.int32, v.shape, 1)
    out = jnp.where(col < A, TURN_RANGE * jnp.tanh(v),
                    jnp.where(col < A2, _softplus(v), v))
    out_ref[...] = out.reshape(tile_t, B, OUT_W)                 # one block store / chunk


# -------------------------------- wrappers -----------------------------------
def _actor_call(xs, h0, w_slab, b_slab, tile_t):
    """xs: [T, B, IN_DIM] -> fused output [T, B, 2A+H] = [mu | std | h_out]."""
    T, B, _ = xs.shape
    n_chunks = -(-T // tile_t)
    t_pad = n_chunks * tile_t
    if t_pad != T:
        xs = jnp.pad(xs, ((0, t_pad - T), (0, 0), (0, 0)))

    grid_spec = pltpu.PrefetchScalarGridSpec(
        num_scalar_prefetch=0,
        grid=(n_chunks,),
        in_specs=[
            pl.BlockSpec((tile_t, B, IN_DIM), lambda t: (t, 0, 0)),  # x chunk
            pl.BlockSpec((B, HIDDEN), lambda t: (0, 0)),             # h0 (resident)
            pl.BlockSpec((W_ROWS, W_COLS), lambda t: (0, 0)),        # weight slab (resident)
            pl.BlockSpec((8, W_COLS), lambda t: (0, 0)),             # bias slab (resident)
        ],
        out_specs=pl.BlockSpec((tile_t, B, OUT_W), lambda t: (t, 0, 0)),
        scratch_shapes=[pltpu.VMEM((B, HIDDEN), jnp.float32)],       # recurrent carry
    )
    out = pl.pallas_call(
        functools.partial(actor_kernel, tile_t=tile_t),
        out_shape=jax.ShapeDtypeStruct((t_pad, B, OUT_W), jnp.float32),
        grid_spec=grid_spec,
        compiler_params=pltpu.CompilerParams(
            dimension_semantics=("arbitrary",)),   # sequential: recurrent carry
    )(xs, h0, w_slab, b_slab)
    return out[:T]


def actor_forward(inputs, h_in, packed_params):
    """Single-step forward: inputs [B, IN_DIM], h_in [B, H] -> (mu, std, h_out)."""
    w_slab, b_slab = packed_params
    out = _actor_call(inputs[None], h_in, w_slab, b_slab, tile_t=1)[0]
    return out[:, :ACT_DIM], out[:, ACT_DIM:A2], out[:, A2:]


def actor_rollout(inputs_seq, h_in, packed_params, tile_t=TILE_T):
    """T-step rollout: inputs_seq [T, B, IN_DIM]; weights stay VMEM-resident."""
    w_slab, b_slab = packed_params
    T = inputs_seq.shape[0]
    out = _actor_call(inputs_seq, h_in, w_slab, b_slab, tile_t=min(tile_t, T))
    return out[..., :ACT_DIM], out[..., ACT_DIM:A2], out[..., A2:]


# --------------------------- deterministic params ----------------------------
def init_params(key):
    ks = jax.random.split(key, 10)

    def uniform(k, shape, bound):
        return jax.random.uniform(k, shape, jnp.float32, -bound, bound)

    # fc1: Linear(IN_DIM, HIDDEN)  -> stored transposed (IN_DIM, HIDDEN)
    b = 1.0 / jnp.sqrt(IN_DIM)
    w1 = uniform(ks[0], (IN_DIM, HIDDEN), b)
    b1 = uniform(ks[1], (1, HIDDEN), b)

    # GRUCell(HIDDEN, HIDDEN): weight_ih (3H, H) -> stored transposed (H, 3H)
    b = 1.0 / jnp.sqrt(HIDDEN)
    wih = uniform(ks[2], (HIDDEN, 3 * HIDDEN), b)
    bih = uniform(ks[3], (1, 3 * HIDDEN), b)
    whh = uniform(ks[4], (HIDDEN, 3 * HIDDEN), b)
    bhh = uniform(ks[5], (1, 3 * HIDDEN), b)

    # fc_mu / fc_std: Linear(HIDDEN, ACT_DIM) -> stored transposed (HIDDEN, ACT_DIM)
    wmu = uniform(ks[6], (HIDDEN, ACT_DIM), b)
    bmu = uniform(ks[7], (1, ACT_DIM), b)
    wstd = uniform(ks[8], (HIDDEN, ACT_DIM), b)
    bstd = uniform(ks[9], (1, ACT_DIM), b)

    return (w1, b1, wih, bih, whh, bhh, wmu, bmu, wstd, bstd)


def pack_params(params):
    """Pack the 10 module parameters into 2 contiguous VMEM slabs."""
    (w1, b1, wih, bih, whh, bhh, wmu, bmu, wstd, bstd) = params
    H, A = HIDDEN, ACT_DIM

    w_slab = jnp.zeros((W_ROWS, W_COLS), jnp.float32)
    # fc1
    w_slab = w_slab.at[W1_ROW:W1_ROW + IN_DIM, 0:H].set(w1)
    # GRU input / hidden projections (kept separate -> no lane concat in kernel)
    w_slab = w_slab.at[WIH_ROW:WIH_ROW + H, 0:H3].set(wih)
    w_slab = w_slab.at[WHH_ROW:WHH_ROW + H, 0:H3].set(whh)
    # extended heads [mu | std | identity passthrough for h]
    w_slab = w_slab.at[WH_ROW:WH_ROW + H, 0:A].set(wmu)
    w_slab = w_slab.at[WH_ROW:WH_ROW + H, A:A2].set(wstd)
    w_slab = w_slab.at[WH_ROW:WH_ROW + H, A2:A2 + H].set(jnp.eye(H, dtype=jnp.float32))

    b_slab = jnp.zeros((8, W_COLS), jnp.float32)
    b_slab = b_slab.at[0, 0:H].set(b1[0])
    b_slab = b_slab.at[1, 0:H3].set(bih[0])
    b_slab = b_slab.at[2, 0:H3].set(bhh[0])
    b_slab = b_slab.at[3, 0:A].set(bmu[0])
    b_slab = b_slab.at[3, A:A2].set(bstd[0])
    return w_slab, b_slab


# --------------------------- pure-JAX reference -------------------------------
def actor_reference(inputs, h_in, params):
    (w1, b1, wih, bih, whh, bhh, wmu, bmu, wstd, bstd) = params
    a1 = jax.nn.relu(inputs @ w1 + b1)
    gi = a1 @ wih + bih
    gh = h_in @ whh + bhh
    H = HIDDEN
    r = jax.nn.sigmoid(gi[:, :H] + gh[:, :H])
    z = jax.nn.sigmoid(gi[:, H:2 * H] + gh[:, H:2 * H])
    n = jnp.tanh(gi[:, 2 * H:] + r * gh[:, 2 * H:])
    h_out = (1.0 - z) * n + z * h_in
    mu = TURN_RANGE * jnp.tanh(h_out @ wmu + bmu)
    std = jax.nn.softplus(h_out @ wstd + bstd)
    return mu, std, h_out


def _close(a, b):
    return bool(jnp.allclose(a, b, atol=1e-4, rtol=1e-4))


if __name__ == "__main__":
    key = jax.random.PRNGKey(0)
    k_in, k_h, k_p, k_seq = jax.random.split(key, 4)

    params = init_params(k_p)
    packed = pack_params(params)

    # --- single-step forward (T = 1) ---
    inputs = jax.random.normal(k_in, (BATCH, IN_DIM), jnp.float32)
    h_in = jax.random.normal(k_h, (BATCH, HIDDEN), jnp.float32)

    mu, std, h_out = actor_forward(inputs, h_in, packed)
    jax.block_until_ready((mu, std, h_out))

    mu_r, std_r, h_r = actor_reference(inputs, h_in, params)
    assert _close(mu, mu_r), "mu mismatch (single step)"
    assert _close(std, std_r), "std mismatch (single step)"
    assert _close(h_out, h_r), "h_out mismatch (single step)"

    # --- T-step rollout: T=12 exercises TILE_T=8 chunking + tail padding ---
    T = 12
    xs = jax.random.normal(k_seq, (T, BATCH, IN_DIM), jnp.float32)
    mu_s, std_s, h_s = actor_rollout(xs, h_in, packed)
    jax.block_until_ready((mu_s, std_s, h_s))

    h_ref = h_in
    for t in range(T):
        mu_t, std_t, h_ref = actor_reference(xs[t], h_ref, params)
        assert _close(mu_s[t], mu_t), f"mu mismatch at step {t}"
        assert _close(std_s[t], std_t), f"std mismatch at step {t}"
        assert _close(h_s[t], h_ref), f"h_out mismatch at step {t}"

    print("KERNEL_OK")
</pallas_src>

<mosaic_0001>
module attributes {stable_mosaic.version = 11 : i64} {
  func.func @actor_kernel(%arg0: i32, %arg1: memref<1x8x32xf32, #tpu.memory_space<vmem>>, %arg2: memref<8x32xf32, #tpu.memory_space<vmem>>, %arg3: memref<128x128xf32, #tpu.memory_space<vmem>>, %arg4: memref<8x128xf32, #tpu.memory_space<vmem>>, %arg5: memref<1x8x40xf32, #tpu.memory_space<vmem>>, %arg6: memref<8x32xf32, #tpu.memory_space<vmem>>) attributes {dimension_semantics = [#tpu.dimension_semantics<arbitrary>], iteration_bounds = array<i64: 1>, scalar_prefetch = 0 : i64, scratch_operands = 1 : i64, tpu.core_type = #tpu.core_type<tc>, window_params = [{transform_indices = @transform_0, window_bounds = array<i64: 1, 8, 32>}, {pipeline_mode = #tpu.pipeline_mode<synchronous>, transform_indices = @transform_1, window_bounds = array<i64: 8, 32>}, {pipeline_mode = #tpu.pipeline_mode<synchronous>, transform_indices = @transform_2, window_bounds = array<i64: 128, 128>}, {pipeline_mode = #tpu.pipeline_mode<synchronous>, transform_indices = @transform_3, window_bounds = array<i64: 8, 128>}, {transform_indices = @transform_4, window_bounds = array<i64: 1, 8, 40>}]} {
    %c0_i32 = arith.constant 0 : i32
    %0 = arith.cmpi eq, %arg0, %c0_i32 : i32
    %1 = arith.extui %0 : i1 to i32
    %c0_i32_0 = arith.constant 0 : i32
    %2 = arith.cmpi ne, %1, %c0_i32_0 : i32
    scf.if %2 {
      %c0_29 = arith.constant 0 : index
      %c0_30 = arith.constant 0 : index
      %68 = vector.load %arg2[%c0_29, %c0_30] : memref<8x32xf32, #tpu.memory_space<vmem>>, vector<8x32xf32>
      %c0_31 = arith.constant 0 : index
      %c0_32 = arith.constant 0 : index
      %69 = vector.load %arg6[%c0_31, %c0_32] : memref<8x32xf32, #tpu.memory_space<vmem>>, vector<8x32xf32>
      tpu.vector_store %arg6[%c0_31, %c0_32], %68 {strides = array<i32>} : memref<8x32xf32, #tpu.memory_space<vmem>>, vector<8x32xf32>,
    } else {
    }
    %c0 = arith.constant 0 : index
    %c0_1 = arith.constant 0 : index
    %c0_2 = arith.constant 0 : index
    %3 = vector.load %arg1[%c0, %c0_1, %c0_2] : memref<1x8x32xf32, #tpu.memory_space<vmem>>, vector<1x8x32xf32>
    %4 = vector.shape_cast %3 : vector<1x8x32xf32> to vector<8x32xf32>
    %c0_3 = arith.constant 0 : index
    %c0_4 = arith.constant 0 : index
    %5 = vector.load %arg3[%c0_3, %c0_4] : memref<128x128xf32, #tpu.memory_space<vmem>>, vector<32x32xf32>
    %c0_5 = arith.constant 0 : index
    %c0_6 = arith.constant 0 : index
    %6 = vector.load %arg4[%c0_5, %c0_6] : memref<8x128xf32, #tpu.memory_space<vmem>>, vector<1x32xf32>
    %cst = arith.constant dense<0.000000e+00> : vector<8x32xf32>
    %7 = tpu.matmul %4, %5, %cst {dimension_numbers = #tpu.dot_dimension_numbers<[1], [0], [0], [1], [0, 0, 1, 1], [], []>} : vector<8x32xf32>, vector<32x32xf32>, vector<8x32xf32> -> vector<8x32xf32>
    %8 = vector.broadcast %6 : vector<1x32xf32> to vector<8x32xf32>
    %9 = arith.addf %7, %8 : vector<8x32xf32>
    %cst_7 = arith.constant 0.000000e+00 : f32
    %10 = vector.broadcast %cst_7 : f32 to vector<8x32xf32>
    %11 = arith.maximumf %9, %10 : vector<8x32xf32>
    %c32 = arith.constant 32 : index
    %c0_8 = arith.constant 0 : index
    %12 = vector.load %arg3[%c32, %c0_8] : memref<128x128xf32, #tpu.memory_space<vmem>>, vector<32x96xf32>
    %c64 = arith.constant 64 : index
    %c0_9 = arith.constant 0 : index
    %13 = vector.load %arg3[%c64, %c0_9] : memref<128x128xf32, #tpu.memory_space<vmem>>, vector<32x96xf32>
    %c1 = arith.constant 1 : index
    %c0_10 = arith.constant 0 : index
    %14 = vector.load %arg4[%c1, %c0_10] : memref<8x128xf32, #tpu.memory_space<vmem>>, vector<1x96xf32>
    %c2 = arith.constant 2 : index
    %c0_11 = arith.constant 0 : index
    %15 = vector.load %arg4[%c2, %c0_11] : memref<8x128xf32, #tpu.memory_space<vmem>>, vector<1x96xf32>
    %c0_12 = arith.constant 0 : index
    %c0_13 = arith.constant 0 : index
    %16 = vector.load %arg6[%c0_12, %c0_13] : memref<8x32xf32, #tpu.memory_space<vmem>>, vector<8x32xf32>
    %cst_14 = arith.constant dense<0.000000e+00> : vector<8x96xf32>
    %17 = tpu.matmul %11, %12, %cst_14 {dimension_numbers = #tpu.dot_dimension_numbers<[1], [0], [0], [1], [0, 0, 1, 1], [], []>} : vector<8x32xf32>, vector<32x96xf32>, vector<8x96xf32> -> vector<8x96xf32>
    %18 = vector.broadcast %14 : vector<1x96xf32> to vector<8x96xf32>
    %19 = arith.addf %17, %18 : vector<8x96xf32>
    %cst_15 = arith.constant dense<0.000000e+00> : vector<8x96xf32>
    %20 = tpu.matmul %16, %13, %cst_15 {dimension_numbers = #tpu.dot_dimension_numbers<[1], [0], [0], [1], [0, 0, 1, 1], [], []>} : vector<8x32xf32>, vector<32x96xf32>, vector<8x96xf32> -> vector<8x96xf32>
    %21 = vector.broadcast %15 : vector<1x96xf32> to vector<8x96xf32>
    %22 = arith.addf %20, %21 : vector<8x96xf32>
    %23 = vector.extract_strided_slice %19 {offsets = [0, 0], sizes = [8, 64], strides = [1, 1]} : vector<8x96xf32> to vector<8x64xf32>
    %24 = vector.extract_strided_slice %22 {offsets = [0, 0], sizes = [8, 64], strides = [1, 1]} : vector<8x96xf32> to vector<8x64xf32>
    %25 = arith.addf %23, %24 : vector<8x64xf32>
    %26 = arith.negf %25 : vector<8x64xf32>
    %27 = math.exp %26 : vector<8x64xf32>
    %cst_16 = arith.constant 1.000000e+00 : f32
    %28 = vector.broadcast %cst_16 : f32 to vector<8x64xf32>
    %29 = arith.addf %28, %27 : vector<8x64xf32>
    %30 = arith.divf %28, %29 : vector<8x64xf32>
    %31 = vector.extract_strided_slice %30 {offsets = [0, 0], sizes = [8, 32], strides = [1, 1]} : vector<8x64xf32> to vector<8x32xf32>
    %32 = vector.extract_strided_slice %30 {offsets = [0, 32], sizes = [8, 32], strides = [1, 1]} : vector<8x64xf32> to vector<8x32xf32>
    %33 = vector.extract_strided_slice %19 {offsets = [0, 64], sizes = [8, 32], strides = [1, 1]} : vector<8x96xf32> to vector<8x32xf32>
    %34 = vector.extract_strided_slice %22 {offsets = [0, 64], sizes = [8, 32], strides = [1, 1]} : vector<8x96xf32> to vector<8x32xf32>
    %35 = arith.mulf %31, %34 : vector<8x32xf32>
    %36 = arith.addf %33, %35 : vector<8x32xf32>
    %37 = math.tanh %36 : vector<8x32xf32>
    %cst_17 = arith.constant 1.000000e+00 : f32
    %38 = vector.broadcast %cst_17 : f32 to vector<8x32xf32>
    %39 = arith.subf %38, %32 : vector<8x32xf32>
    %40 = arith.mulf %39, %37 : vector<8x32xf32>
    %41 = arith.mulf %32, %16 : vector<8x32xf32>
    %42 = arith.addf %40, %41 : vector<8x32xf32>
    %c0_18 = arith.constant 0 : index
    %c0_19 = arith.constant 0 : index
    %43 = vector.load %arg6[%c0_18, %c0_19] : memref<8x32xf32, #tpu.memory_space<vmem>>, vector<8x32xf32>
    tpu.vector_store %arg6[%c0_18, %c0_19], %42 {strides = array<i32>} : memref<8x32xf32, #tpu.memory_space<vmem>>, vector<8x32xf32>,
    %c96 = arith.constant 96 : index
    %c0_20 = arith.constant 0 : index
    %44 = vector.load %arg3[%c96, %c0_20] : memref<128x128xf32, #tpu.memory_space<vmem>>, vector<32x40xf32>
    %c3 = arith.constant 3 : index
    %c0_21 = arith.constant 0 : index
    %45 = vector.load %arg4[%c3, %c0_21] : memref<8x128xf32, #tpu.memory_space<vmem>>, vector<1x40xf32>
    %cst_22 = arith.constant dense<0.000000e+00> : vector<8x40xf32>
    %46 = tpu.matmul %42, %44, %cst_22 {dimension_numbers = #tpu.dot_dimension_numbers<[1], [0], [0], [1], [0, 0, 1, 1], [], []>} : vector<8x32xf32>, vector<32x40xf32>, vector<8x40xf32> -> vector<8x40xf32>
    %47 = vector.broadcast %45 : vector<1x40xf32> to vector<8x40xf32>
    %48 = arith.addf %46, %47 : vector<8x40xf32>
    %49 = tpu.iota {dimensions = array<i32: 1>} : vector<8x40xi32>
    %c4_i32 = arith.constant 4 : i32
    %50 = vector.broadcast %c4_i32 : i32 to vector<8x40xi32>
    %51 = arith.cmpi slt, %49, %50 : vector<8x40xi32>
    %52 = math.tanh %48 : vector<8x40xf32>
    %cst_23 = arith.constant 3.000000e+00 : f32
    %53 = vector.broadcast %cst_23 : f32 to vector<8x40xf32>
    %54 = arith.mulf %53, %52 : vector<8x40xf32>
    %c8_i32 = arith.constant 8 : i32
    %55 = vector.broadcast %c8_i32 : i32 to vector<8x40xi32>
    %56 = arith.cmpi slt, %49, %55 : vector<8x40xi32>
    %cst_24 = arith.constant 2.000000e+01 : f32
    %57 = vector.broadcast %cst_24 : f32 to vector<8x40xf32>
    %58 = arith.cmpf ogt, %48, %57 : vector<8x40xf32>
    %cst_25 = arith.constant 2.000000e+01 : f32
    %59 = vector.broadcast %cst_25 : f32 to vector<8x40xf32>
    %60 = arith.minimumf %48, %59 : vector<8x40xf32>
    %61 = math.exp %60 : vector<8x40xf32>
    %62 = math.log1p %61 : vector<8x40xf32>
    %63 = arith.select %58, %48, %62 : vector<8x40xi1>, vector<8x40xf32>
    %64 = arith.select %56, %63, %48 : vector<8x40xi1>, vector<8x40xf32>
    %65 = arith.select %51, %54, %64 : vector<8x40xi1>, vector<8x40xf32>
    %66 = vector.shape_cast %65 : vector<8x40xf32> to vector<1x8x40xf32>
    %c0_26 = arith.constant 0 : index
    %c0_27 = arith.constant 0 : index
    %c0_28 = arith.constant 0 : index
    %67 = vector.load %arg5[%c0_26, %c0_27, %c0_28] : memref<1x8x40xf32, #tpu.memory_space<vmem>>, vector<1x8x40xf32>
    tpu.vector_store %arg5[%c0_26, %c0_27, %c0_28], %66 {strides = array<i32>} : memref<1x8x40xf32, #tpu.memory_space<vmem>>, vector<1x8x40xf32>,
    return
  }
  func.func @transform_0(%arg0: i32) -> (i32, i32, i32) {
    %c0_i32 = arith.constant 0 : i32
    %c0_i32_0 = arith.constant 0 : i32
    %c0_i32_1 = arith.constant 0 : i32
    return %arg0, %c0_i32, %c0_i32_0 : i32, i32, i32
  }
  func.func @transform_1(%arg0: i32) -> (i32, i32) {
    %c0_i32 = arith.constant 0 : i32
    %c0_i32_0 = arith.constant 0 : i32
    %c0_i32_1 = arith.constant 0 : i32
    return %c0_i32, %c0_i32_0 : i32, i32
  }
  func.func @transform_2(%arg0: i32) -> (i32, i32) {
    %c0_i32 = arith.constant 0 : i32
    %c0_i32_0 = arith.constant 0 : i32
    %c0_i32_1 = arith.constant 0 : i32
    return %c0_i32, %c0_i32_0 : i32, i32
  }
  func.func @transform_3(%arg0: i32) -> (i32, i32) {
    %c0_i32 = arith.constant 0 : i32
    %c0_i32_0 = arith.constant 0 : i32
    %c0_i32_1 = arith.constant 0 : i32
    return %c0_i32, %c0_i32_0 : i32, i32
  }
  func.func @transform_4(%arg0: i32) -> (i32, i32, i32) {
    %c0_i32 = arith.constant 0 : i32
    %c0_i32_0 = arith.constant 0 : i32
    %c0_i32_1 = arith.constant 0 : i32
    return %arg0, %c0_i32, %c0_i32_0 : i32, i32, i32
  }
}

</mosaic_0001>

<bundles_post_ra>
// kernel: tpu_custom_call.1
= control target key start
LH: loop header
LB: loop body
LE: loop exit
PB: predicated region body
PF: predicated region fallthrough
CT: control target
= control target key end

     0   :  { %9 = vsyncpa [#allocation4], 0  ;;  %s797_s0 = inlined_call_operand.hbm [shape: f32[1,8,32], index: 0, kind: input, shape index: {}]   ;;  %s798_s1 = inlined_call_operand.hbm [shape: f32[8,32], index: 1, kind: input, shape index: {}]   ;;  %s799_s2 = inlined_call_operand.hbm [shape: f32[128,128], index: 2, kind: input, shape index: {}]   ;;  %s800_s3 = inlined_call_operand.vmem [shape: f32[8,128], index: 3, kind: input, shape index: {}]   ;;  %s801_s4 = inlined_call_operand.hbm [shape: f32[1,8,40], index: 4, kind: output, shape index: {}]  }
   0x1   :  { %10 = vsyncpa [#allocation7], 0 }
   0x2   :  { %11 = vsyncpa [#allocation5], 0  ;;  %s682_s15 = smov [#allocation6]   ;;  %s683_s17 = smov [#allocation3]  }
   0x3   :  { %s28_s16 = sshll.u32 %s682_s15, 4  ;;  %s18_s18 = sshll.u32 %s683_s17, 4  ;;  %s29_s16 = int_to_ptr.vmem [resolvable:$true] %s28_s16  ;;  %s19_s18 = int_to_ptr.vmem [resolvable:$true] %s18_s18 }
   0x4   :  { %s588_s21 = scalar_lea.hbm %s798_s1, 128 }
   0x5   :  { %p589_p0 = scmp.ne.s32.totalorder %s798_s1, %s588_s21  ;;  %p592_p1 = scmp.lt.u32.totalorder %s588_s21, %s798_s1 }
   0x7   :  { %p594_p2 = pnand %p592_p1, %p589_p0 }
   0x9   :  { %597 = shalt.err (!%p594_p2)
}
   0xa   :  { %s598_s26 = scalar_lea.vmem %s29_s16, 128  ;;  %p603_p4 = scmp.lt.s32.totalorder %s29_s16, %s29_s16 }
   0xb   :  { %p599_p3 = scmp.ne.s32.totalorder %s29_s16, %s598_s26  ;;  %p604_p5 = scmp.lt.s32.totalorder %s598_s26, %s598_s26 }
   0xd   :  { %p605_p6 = por %p604_p5, %p603_p4 }
   0xf   :  { %p606_p7 = pnand %p605_p6, %p599_p3 }
  0x11   :  { %609 = shalt.err (!%p606_p7)
}
  0x12   :  { %31 = dma.hbm_to_vmem [thread:$0]  %s798_s1, 128, %s29_s16, [#allocation7]  }
  0x13   :  { %s610_s5 = scalar_lea.hbm %s797_s0, 128 }
  0x14   :  { %p611_p8 = scmp.ne.s32.totalorder %s797_s0, %s610_s5  ;;  %p614_p9 = scmp.lt.u32.totalorder %s610_s5, %s797_s0 }
  0x16   :  { %p616_p10 = pnand %p614_p9, %p611_p8 }
  0x18   :  { %619 = shalt.err (!%p616_p10)
}
  0x19   :  { %s620_s10 = scalar_lea.vmem %s19_s18, 128  ;;  %p625_p12 = scmp.lt.s32.totalorder %s19_s18, %s19_s18 }
  0x1a   :  { %p621_p11 = scmp.ne.s32.totalorder %s19_s18, %s620_s10  ;;  %p626_p13 = scmp.lt.s32.totalorder %s620_s10, %s620_s10 }
  0x1c   :  { %p627_p0 = por %p626_p13, %p625_p12 }
  0x1e   :  { %p628_p1 = pnand %p627_p0, %p621_p11 }
  0x20   :  { %631 = shalt.err (!%p628_p1)
}
  0x21   :  { %21 = dma.hbm_to_vmem [thread:$0]  %s797_s0, 128, %s19_s18, [#allocation4]  }
  0x22   :  { %s684_s12 = smov [#allocation8]   ;;  %s632_s16 = scalar_lea.hbm %s799_s2, 2048 }
  0x23   :  { %s37_s13 = sshll.u32 %s684_s12, 4  ;;  %p633_p2 = scmp.ne.s32.totalorder %s799_s2, %s632_s16  ;;  %s38_s13 = int_to_ptr.vmem [resolvable:$true] %s37_s13 }
  0x24   :  { %p636_p3 = scmp.lt.u32.totalorder %s632_s16, %s799_s2 }
  0x26   :  { %p638_p4 = pnand %p636_p3, %p633_p2 }
  0x28   :  { %641 = shalt.err (!%p638_p4)
}
  0x29   :  { %s642_s22 = scalar_lea.vmem %s38_s13, 2048  ;;  %p647_p6 = scmp.lt.s32.totalorder %s38_s13, %s38_s13 }
  0x2a   :  { %p643_p5 = scmp.ne.s32.totalorder %s38_s13, %s642_s22  ;;  %p648_p7 = scmp.lt.s32.totalorder %s642_s22, %s642_s22 }
  0x2c   :  { %p649_p8 = por %p648_p7, %p647_p6 }
  0x2e   :  { %p650_p9 = pnand %p649_p8, %p643_p5 }
  0x30   :  { %653 = shalt.err (!%p650_p9)
}
  0x31   :  { %s685_s0 = smov 128   ;;  %s686_s18 = smov 8  }
  0x32   :  { %43 = dma.hbm_to_vmem [thread:$0]  %s799_s2, 2048, %s38_s13, [#allocation7], %s685_s0, %s685_s0, %s686_s18  }
  0x33   :  { %676 = dma.done.wait [#allocation4], 128  }
  0x34   :  { %677 = vsyncadd [#allocation4], 4294967168 }
  0x35   :  { %678 = dma.done.wait [#allocation7], 2176  }
  0x36   :  { %679 = vsyncadd [#allocation7], 4294965120  ;;  %v687_v0 = vmov 0.0|0.0   ;;  %vm688_vm0 = vmmov 0   ;;  %v689_v1 = vmov 0.0   ;;  %v63_v2 = vld [vmem:[#allocation8] sm:$0xff] }
  0x37   :  { %540 = vmatprep.subr.bf16.mxu0 %v687_v0  ;;  %504 = vmatprep.mubr.msk.f32.mxu0 %vm688_vm0, %v689_v1  ;;  %v64_v3 = vld [vmem:[#allocation8 + $0x8] sm:$0xff]  ;;  %v65_v4 = vld [vmem:[#allocation8 + $0x10] sm:$0xff]  ;;  %v66_v6 = vld [vmem:[#allocation8 + $0x18] sm:$0xff]  ;;  %vm60_vm1 = vcmask 261120   ;;  %s690_s28 = smov 64   ;;  %s691_s5 = smov 96  }
  0x38   :  { %546 = vmatprep.subr.bf16.mxu1 %v687_v0  ;;  %515 = vmatprep.mubr.msk.f32.mxu1 %vm688_vm0, %v689_v1  ;;  %v541_v5 = vpack.c.bf16 %v64_v3, %v63_v2  ;;  %v59_v7 = vld [vmem:[#allocation6] sm:$0xff]  ;;  %v544_v8 = vpack.c.bf16 %v66_v6, %v65_v4  ;;  %v147_v9 = vld [vmem:[#allocation8 + $0x20] sm:$0xff]  ;;  %v148_v10 = vld [vmem:[#allocation8 + $0x28] sm:$0xff]  ;;  %s692_s6 = smov 32   ;;  %v427_v4 = vlaneseq  ;;  %vm449_vm6 = vcmask 326656  }
  0x39   :  { %61 = vst.msk [vmem:[#allocation2] sm:$0xff] %vm60_vm1, %v59_v7  ;;  %v151_v11 = vld [vmem:[#allocation8 + $0x40] sm:$0xff]  ;;  %v152_v12 = vld [vmem:[#allocation8 + $0x48] sm:$0xff]  ;;  %v547_v13 = vpack.c.bf16 %v148_v10, %v147_v9  ;;  %v62_v14 = vld [vmem:[#allocation3] sm:$0xff] }
  0x3a   :  { %542 = vmatpush3.bf16.msra.mxu0 %v541_v5  ;;  %v553_v15 = vpack.c.bf16 %v152_v12, %v151_v11  ;;  %v153_v16 = vld [vmem:[#allocation8 + $0x50] sm:$0xff]  ;;  %v154_v17 = vld [vmem:[#allocation8 + $0x58] sm:$0xff]  ;;  %v467_v23 = vld [vmem:[%s800_s3] ss:$0 sm:$0xff]  ;;  %v428_v6 = vand.u32 127, %v427_v4 }
  0x3b   :  { %543 = vmatprep.subr.bf16.mxu0 %v687_v0  ;;  %548 = vmatpush3.bf16.msra.mxu1 %v547_v13  ;;  %v556_v18 = vpack.c.bf16 %v154_v17, %v153_v16  ;;  %v149_v20 = vld [vmem:[#allocation8 + $0x30] sm:$0xff]  ;;  %v150_v21 = vld [vmem:[#allocation8 + $0x38] sm:$0xff]  ;;  %v471_v28 = vld [vmem:[%s800_s3 + $0x2] ss:$0 sm:$0xff] }
  0x3c   :  { %549 = vmatprep.subr.bf16.mxu1 %v687_v0  ;;  %v550_v22 = vpack.c.bf16 %v150_v21, %v149_v20  ;;  %v469_v32 = vld [vmem:[%s800_s3 + $0x1] ss:$0 sm:$0xff]  ;;  %v346_v45 = vld [vmem:[#allocation8 + $0x60] sm:$0xff]  ;;  %v348_v47 = vld [vmem:[#allocation8 + $0x70] sm:$0xff]  ;;  %vm432_vm2 = vcmp.lt.s32.totalorder %v428_v6, 8  ;;  %vm429_vm4 = vcmp.lt.s32.totalorder %v428_v6, 4 }
  0x3d   :  { %v347_v46 = vld [vmem:[#allocation8 + $0x68] sm:$0xff]  ;;  %v349_v49 = vld [vmem:[#allocation8 + $0x78] sm:$0xff] }
  0x3e   :  { %545 = vmatpush3.bf16.msra.mxu0 %v544_v8  ;;  %v559_v48 = vpack.c.bf16 %v347_v46, %v346_v45  ;;  %v562_v50 = vpack.c.bf16 %v349_v49, %v348_v47  ;;  %v474_v59 = vld [vmem:[%s800_s3 + $0x3] ss:$0 sm:$0xff]  ;;  %s693_s3 = smov [#allocation9]  }
  0x3f   :  { %552 = vmatprep.subr.bf16.mxu0 %v687_v0  ;;  %551 = vmatpush3.bf16.msra.mxu1 %v550_v22  ;;  %s457_s9 = sshll.u32 %s693_s3, 4  ;;  %s458_s9 = int_to_ptr.vmem [resolvable:$true] %s457_s9 }
  0x40   :  { %v157_v19 = vld [vmem:[#allocation2] sm:$0xff]  ;;  %558 = vmatprep.subr.bf16.mxu1 %v687_v0  ;;  %s654_s10 = scalar_lea.vmem %s458_s9, 128  ;;  %p659_p11 = scmp.lt.s32.totalorder %s458_s9, %s458_s9 }
  0x41   :  { %505 = vmatmul.mubr.msk.f32.vlgmr.msra.gmra.mrb[0].mxu0 %vm60_vm1, %v62_v14  ;;  %p655_p10 = scmp.ne.s32.totalorder %s458_s9, %s654_s10  ;;  %p660_p12 = scmp.lt.s32.totalorder %s654_s10, %s654_s10 }
  0x42   :  { %554 = vmatpush3.bf16.msra.mxu0 %v553_v15  ;;  %526 = vmatprep.mubr.msk.f32.mxu0 %vm688_vm0, %v689_v1 }
  0x43   :  { %555 = vmatprep.subr.bf16.mxu0 %v687_v0  ;;  %p661_p13 = por %p660_p12, %p659_p11 }
  0x45   :  { %p662_p0 = pnand %p661_p13, %p655_p10 }
  0x46   :  { %557 = vmatpush3.bf16.msra.mxu0 %v556_v18 }
  0x49   :  { %527 = vmatmul.mubr.msk.f32.vlgmr.msra.gmra.mrb[2].mxu0 %vm60_vm1, %v157_v19 }
 0x114   :  { %v142_v24 = vpop.f32.mrb[0].mxu0 }
 0x115   :  { %v143_v25 = vadd.f32 %v467_v23, %v142_v24  ;;  %v506_v26 = vpop.f32.mrb[1].mxu0 }
 0x117   :  { %v146_v27 = vmax.f32 %v143_v25, 0.0 }
 0x119   :  { %516 = vmatmul.mubr.msk.f32.vlgmr.msra.gmra.mrb[0].mxu1 %vm60_vm1, %v146_v27 }
 0x11a   :  { %537 = vmatprep.mubr.msk.f32.mxu1 %vm688_vm0, %v689_v1  ;;  %560 = vmatpush3.bf16.msra.mxu1 %v559_v48 }
 0x11b   :  { %561 = vmatprep.subr.bf16.mxu1 %v687_v0 }
 0x11c   :  { %v308_v29 = vpop.f32.mrb[2].mxu0 }
 0x11d   :  { %v309_v30 = vadd.f32 %v471_v28, %v308_v29  ;;  %v528_v31 = vpop.f32.mrb[3].mxu0 }
 0x11e   :  { %563 = vmatpush3.bf16.msra.mxu1 %v562_v50 }
 0x11f   :  { %320 = vrot.lane.b32.xlu0 %v309_v30, %s690_s28 }
 0x191   :  { %v321_v40 = vpop.permute.xlu0 %320 }
 0x1ec   :  { %v231_v33 = vpop.f32.mrb[0].mxu1 }
 0x1ed   :  { %v232_v34 = vadd.f32 %v469_v32, %v231_v33  ;;  %v517_v35 = vpop.f32.mrb[1].mxu1 }
 0x1ef   :  { %v312_v36 = vadd.f32 %v309_v30, %v232_v34 }
 0x1f1   :  { %v473_v37 = vmul.f32 -1.442695, %v312_v36 }
 0x1f3   :  { %576 = vpow2.f32 %v473_v37 }
 0x1fd   :  { %v577_v38 = vpop.eup %576 }
 0x1fe   :  { %v316_v39 = vadd.f32 1.0, %v577_v38 }
 0x200   :  { %578 = vrcp.f32 %v316_v39 }
 0x20a   :  { %v579_v41 = vpop.eup %578 }
 0x20b   :  { %v323_v42 = vmul.f32 %v579_v41, %v321_v40  ;;  %v330_v53 = vsub.f32 1.0, %v579_v41 }
 0x20d   :  { %325 = vrot.lane.b32.xlu0 %v323_v42, %s690_s28 }
 0x27f   :  { %v326_v43 = vpop.permute.xlu0 %325 }
 0x280   :  { %v328_v44 = vadd.f32 %v326_v43, %v232_v34 }
 0x282   :  { %580 = vtanh.f32 %v328_v44 }
 0x28c   :  { %v581_v51 = vpop.eup %580 }
 0x28d   :  { %332 = vrot.lane.b32.xlu1 %v581_v51, %s691_s5 }
 0x291   :  { %336 = vrot.lane.b32.xlu1 %v157_v19, %s692_s6 }
 0x2ff   :  { %v333_v52 = vpop.permute.xlu1 %332 }
 0x300   :  { %v335_v55 = vmul.f32 %v333_v52, %v330_v53 }
 0x303   :  { %v337_v54 = vpop.permute.xlu1 %336 }
 0x304   :  { %v339_v56 = vmul.f32 %v579_v41, %v337_v54 }
 0x306   :  { %v340_v57 = vadd.f32 %v339_v56, %v335_v55 }
 0x308   :  { %342 = vrot.lane.b32.xlu0 %v340_v57, %s691_s5 }
 0x37a   :  { %v343_v58 = vpop.permute.xlu0 %342 }
 0x37b   :  { %345 = vst.msk [vmem:[#allocation2] sm:$0xff] %vm60_vm1, %v343_v58  ;;  %538 = vmatmul.mubr.msk.f32.vlgmr.msra.gmra.mrb[2].mxu1 %vm60_vm1, %v343_v58 }
 0x44e   :  { %v423_v60 = vpop.f32.mrb[2].mxu1 }
 0x44f   :  { %v424_v61 = vadd.f32 %v474_v59, %v423_v60  ;;  %v539_v62 = vpop.f32.mrb[3].mxu1 }
 0x451   :  { %v434_v63 = vmin.f32 %v424_v61, 20.0  ;;  %vm433_vm5 = vcmp.gt.f32.partialorder %v424_v61, 20.0 }
 0x453   :  { %v435_v0 = vmul.f32 1.442695, %v434_v63 }
 0x455   :  { %582 = vpow2.f32 %v435_v0 }
 0x45f   :  { %v583_v1 = vpop.eup %582 }
 0x460   :  { %v437_v2 = vadd.f32 1.0, %v583_v1  ;;  %v440_v3 = vmul.f32 -0.5, %v583_v1  ;;  %v443_v7 = vand.u32 2147483647, %v583_v1 }
 0x462   :  { %584 = vlog2.f32 %v437_v2  ;;  %v441_v5 = vadd.f32 1.0, %v440_v3  ;;  %vm444_vm3 = vcmp.lt.f32.partialorder %v443_v7, 0.0004427343 }
 0x463   :  { %586 = vtanh.f32 %v424_v61 }
 0x464   :  { %v442_v11 = vmul.f32 %v583_v1, %v441_v5 }
 0x46c   :  { %v585_v8 = vpop.eup %584 }
 0x46d   :  { %v587_v9 = vpop.eup %586  ;;  %v439_v10 = vmul.f32 0.6931472, %v585_v8 }
 0x46e   :  { %v431_v13 = vmul.f32 3.0, %v587_v9 }
 0x46f   :  { %v445_v12 = vsel %vm444_vm3, %v442_v11, %v439_v10 }
 0x470   :  { %v446_v14 = vsel %vm433_vm5, %v424_v61, %v445_v12 }
 0x471   :  { %v447_v15 = vsel %vm432_vm2, %v446_v14, %v424_v61 }
 0x472   :  { %v448_v16 = vsel %vm429_vm4, %v431_v13, %v447_v15 }
 0x473   :  { %450 = vst.msk [vmem:[#allocation9] sm:$0xff] %vm449_vm6, %v448_v16 }
 0x474   :  { %665 = shalt.err (!%p662_p0)
}
 0x475   :  { %s666_s12 = scalar_lea.hbm %s801_s4, 128 }
 0x476   :  { %p667_p1 = scmp.ne.s32.totalorder %s801_s4, %s666_s12  ;;  %p670_p2 = scmp.lt.u32.totalorder %s666_s12, %s801_s4 }
 0x478   :  { %p672_p3 = pnand %p670_p2, %p667_p1 }
 0x47a   :  { %675 = shalt.err (!%p672_p3)
}
 0x47b   :  { %460 = dma.vmem_to_hbm [thread:$0]  %s458_s9, 128, %s801_s4, [#allocation5]  }
 0x47c   :  { %680 = dma.done.wait [#allocation5], 128  }
 0x47d   :  { %681 = vsyncadd [#allocation5], 4294967168 }
 0x47e   :  { %464 = vsyncpa [#allocation4], 1 }
 0x47f   :  { %465 = vsyncpa [#allocation7], 1 }
 0x480   :  { %466 = vsyncpa [#allocation5], 1 }

</bundles_post_ra>
